<compile_context>
chip_gen: v7x
topology: tpu7x:2x2x1
jax: 0.10.0
libtpu: 0.0.40
codegen_flags: <defaults>
</compile_context>

<pallas_src>
from functools import partial

import jax
import jax.numpy as jnp
from jax.experimental import pallas as pl
from jax.experimental.pallas import tpu as pltpu


# ----------------------------------------------------------------------------
# In-kernel helpers (tiny n x n per-batch scalar math on (B, 1, 1) values)
# ----------------------------------------------------------------------------
def _gram(cols, n):
    """Gram entries G[j][k] = <cols[j], cols[k]> as (B, 1, 1) values."""
    G = [[None] * n for _ in range(n)]
    for j in range(n):
        for k in range(j + 1):
            g = jnp.sum(cols[j] * cols[k], axis=2, keepdims=True)   # lane reduce
            g = jnp.sum(g, axis=1, keepdims=True)                   # sublane reduce
            G[j][k] = g
            G[k][j] = g
    return G


def _chol_inv(G, n, eps_rel=1e-7):
    """Inverse lower Cholesky factor of the tiny SPD Gram matrix.

    Uses a RELATIVE (trace-based) floor on the Cholesky diagonal so that a
    near-rank-deficient observability matrix gives a bounded, gracefully
    scaled basis instead of 1/sqrt(1e-12) blow-ups.
    """
    tr = G[0][0]
    for j in range(1, n):
        tr = tr + G[j][j]
    floor = eps_rel * tr + jnp.float32(1e-30)

    # Unrolled batched Cholesky.
    L = [[None] * n for _ in range(n)]
    for j in range(n):
        d = G[j][j]
        for k in range(j):
            d = d - L[j][k] * L[j][k]
        d = jnp.maximum(d, floor)
        L[j][j] = jnp.sqrt(d)
        inv_d = jax.lax.rsqrt(d)
        for i in range(j + 1, n):
            s = G[i][j]
            for k in range(j):
                s = s - L[i][k] * L[j][k]
            L[i][j] = s * inv_d

    # L^{-1} by forward substitution.
    Linv = [[None] * n for _ in range(n)]
    for j in range(n):
        Linv[j][j] = 1.0 / L[j][j]
    for i in range(n):
        for j in range(i):
            s = L[i][j] * Linv[j][j]
            for k in range(j + 1, i):
                s = s + L[i][k] * Linv[k][j]
            Linv[i][j] = -s * Linv[i][i]
    return Linv


# ----------------------------------------------------------------------------
# Pallas kernel: observability-matrix construction + Grassmannian projection
# ----------------------------------------------------------------------------
def _om_kernel(ct_ref, p_ref, o_ref, *, m, n, pd):
    ct = ct_ref[...].astype(jnp.float32)   # (B, n*pd)    fully lane/sublane dense
    p = p_ref[...].astype(jnp.float32)     # (B, m, n*n)  stacked (A^T)^i, flat

    # Hoisted row views of C^T: rows[k] = C^T[k, :] as (B, 1, pd).
    # (JAX does not CSE broadcast_in_dim/reshape; slice once, reuse for all j.)
    rows = [ct[:, k * pd:(k + 1) * pd][:, None, :] for k in range(n)]

    # Column j of O^T with the m block-rows stacked along axis 1:
    #   cols[j][b, i, :] = ((A^T)^i C^T)[j, :] = sum_k P[b, i, j*n+k] * rows[k]
    cols = []
    for j in range(n):
        acc = None
        for k in range(n):
            pjk = p[:, :, j * n + k][:, :, None]          # (B, m, 1)
            term = pjk * rows[k]                          # (B, m, pd) broadcast MAC
            acc = term if acc is None else acc + term
        cols.append(acc)

    # --- Single CholeskyQR sweep over the big columns -----------------------
    # One Gram sweep + one apply sweep (vs. two of each for CholeskyQR2); C
    # comes from an SVD so O is well conditioned and a single pass meets the
    # accuracy target.  A Gram-domain refinement of the tiny triangular factor
    # (scalar-shaped only, essentially free) recovers most of QR2's benefit.
    G1 = _gram(cols, n)
    L1inv = _chol_inv(G1, n)

    # G2 = L1inv @ G1 @ L1inv^T   (per-batch n x n scalar math).
    G2 = [[None] * n for _ in range(n)]
    for j in range(n):
        for k in range(j + 1):
            s = None
            for a in range(j + 1):
                for c in range(k + 1):
                    t = L1inv[j][a] * G1[a][c] * L1inv[k][c]
                    s = t if s is None else s + t
            G2[j][k] = s
            G2[k][j] = s
    L2inv = _chol_inv(G2, n)

    # Combined lower-triangular factor:  Q^T = (L2inv @ L1inv) @ O^T.
    Linv = [[None] * n for _ in range(n)]
    for j in range(n):
        for k in range(j + 1):
            s = None
            for a in range(k, j + 1):
                t = L2inv[j][a] * L1inv[a][k]
                s = t if s is None else s + t
            Linv[j][k] = s

    # Apply once and store: each column is a contiguous (B, m, pd) slab of the
    # (B, n*m, pd) output -> dense pd-lane stores, minimal sublane padding.
    for j in range(n):
        q = Linv[j][0] * cols[0]
        for k in range(1, j + 1):
            q = q + Linv[j][k] * cols[k]
        o_ref[:, j * m:(j + 1) * m, :] = q.astype(o_ref.dtype)


# ----------------------------------------------------------------------------
# Tiling policy (generation-aware)
# ----------------------------------------------------------------------------
def _num_tensorcores_per_chip():
    """Best-effort detection; v4/v5p/v7x have 2 TensorCores, v5e/v6e have 1."""
    try:
        kind = jax.devices()[0].device_kind.lower()
    except Exception:
        return 1
    for tag in ("v7", "v5p", "v4"):
        if tag in kind:
            return 2
    return 1


def _pick_b_tile(b, m, n, pd, *, vmem_budget_bytes=20 << 20, max_tile=32):
    """Largest batch tile that divides b, keeps sublane-aligned blocks
    (b_tile % 8 == 0 or b_tile == b), and fits a conservative per-step VMEM
    estimate.  Only prefer grid splits >= num_cores on multi-TC chips."""
    def pad8(x):
        return -(-x // 8) * 8

    # live cols + applied cols + double-buffered output + double-buffered inputs
    bytes_per_batch = 4 * (2 * n * pad8(m) * pd
                           + 2 * pad8(n * m) * pd
                           + 2 * (n * pd + pad8(m) * 128))
    cap = max(1, min(max_tile, vmem_budget_bytes // max(bytes_per_batch, 1)))

    cands = [t for t in range(1, b + 1)
             if b % t == 0 and (t % 8 == 0 or t == b)]
    fitting = [t for t in cands if t <= cap] or [min(cands)]

    ncores = _num_tensorcores_per_chip()
    if ncores > 1:
        even = [t for t in fitting if (b // t) % ncores == 0]
        if even:
            fitting = even
    return max(fitting)


# ----------------------------------------------------------------------------
# Wrapper
# ----------------------------------------------------------------------------
def observability_from_CA(C, A, m, *, transposed_output=False):
    """C: (b, patch_dim, n), A: (b, n, n) -> orthonormal-column observability
    matrix.  Default layout (b, m*patch_dim, n); transposed_output=True returns
    the O^T representative (b, n, m*patch_dim) and skips the final relayout."""
    b, patch_dim, n = C.shape

    # Lane-dense, fully flattened kernel inputs.
    Ct = jnp.swapaxes(C, 1, 2).astype(jnp.float32).reshape(b, n * patch_dim)

    # Stacked powers of A^T (tiny n x n matmuls, negligible next to the SVD),
    # flattened to (b, m, n*n) so the VMEM tile has no (3,3) trailing padding.
    At = jnp.swapaxes(A, 1, 2).astype(jnp.float32)
    eye = jnp.broadcast_to(jnp.eye(n, dtype=jnp.float32), (b, n, n))
    pows = [eye]
    for _ in range(1, m):
        pows.append(jnp.einsum("bij,bjk->bik", pows[-1], At))
    P = jnp.stack(pows, axis=1).reshape(b, m, n * n)

    b_tile = _pick_b_tile(b, m, n, patch_dim)
    kernel = partial(_om_kernel, m=m, n=n, pd=patch_dim)
    out_t = pl.pallas_call(
        kernel,
        out_shape=jax.ShapeDtypeStruct((b, n * m, patch_dim), jnp.float32),
        grid_spec=pltpu.PrefetchScalarGridSpec(
            num_scalar_prefetch=0,
            grid=(b // b_tile,),
            in_specs=[
                pl.BlockSpec((b_tile, n * patch_dim), lambda i: (i, 0)),
                pl.BlockSpec((b_tile, m, n * n), lambda i: (i, 0, 0)),
            ],
            out_specs=pl.BlockSpec((b_tile, n * m, patch_dim),
                                   lambda i: (i, 0, 0)),
        ),
        compiler_params=pltpu.CompilerParams(
            dimension_semantics=("parallel",),
            vmem_limit_bytes=32 * 1024 * 1024),
    )(Ct, P)

    if transposed_output:
        return out_t.reshape(b, n, m * patch_dim)       # free reshape, no relayout
    # TODO(synk): keeping the O^T layout downstream avoids this full-output
    # relayout (projectors / O^T x are expressible directly on it).
    return jnp.transpose(out_t.reshape(b, n, m, patch_dim),
                         (0, 2, 3, 1)).reshape(b, m * patch_dim, n)


# ----------------------------------------------------------------------------
# Plain-JAX glue
# ----------------------------------------------------------------------------
def to_patch_embedding(img, patch_size):
    """einops Rearrange('b c (h p1) (w p2) -> b (h w) (p1 p2 c)')."""
    b, c, H, W = img.shape
    h, w = H // patch_size, W // patch_size
    x = img.reshape(b, c, h, patch_size, w, patch_size)
    x = jnp.transpose(x, (0, 2, 4, 3, 5, 1))          # (b, h, w, p1, p2, c)
    return x.reshape(b, h * w, patch_size * patch_size * c)


def lds_system_id(x, lds_size):
    """Doretto-style LDS identification per batch element.

    x: (b, num_patches, patch_dim) -> C: (b, patch_dim, n), A: (b, n, n)
    """
    # TODO(synk): SVD / pinv have no clean Pallas equivalent; system
    # identification stays in plain JAX, only the O_m hot path runs in Pallas.
    Y = jnp.swapaxes(x, 1, 2).astype(jnp.float32)       # (b, patch_dim, tau)
    U, S, Vt = jnp.linalg.svd(Y, full_matrices=False)
    C = U[:, :, :lds_size]                              # (b, patch_dim, n)
    X = S[:, :lds_size, None] * Vt[:, :lds_size, :]     # (b, n, tau) states
    X0 = X[:, :, :-1]
    X1 = X[:, :, 1:]
    A = jnp.einsum("bnt,btm->bnm", X1, jnp.linalg.pinv(X0))  # (b, n, n)
    return C, A


class NonTrainableObsMatrixModule:
    """JAX/Pallas port of the (parameter-free) PyTorch module."""

    def __init__(self, image_size=224, patch_size=16, channels=3, m=13,
                 lds_size=3):
        assert image_size % patch_size == 0, (
            "Image dimensions must be divisible by the patch size.")
        self.patch_size = patch_size
        self.m = m
        self.lds_size = lds_size
        self.num_patches = (image_size // patch_size) ** 2
        self.patch_dim = channels * patch_size ** 2

    def __call__(self, img):
        x = to_patch_embedding(img, self.patch_size)         # (b, hw, p1*p2*c)
        C, A = lds_system_id(x, self.lds_size)
        out = observability_from_CA(C, A, self.m)            # (b, m*pd, n)
        return jax.lax.stop_gradient(out)                    # torch.no_grad()


if __name__ == "__main__":
    key = jax.random.PRNGKey(0)
    batch, channels = 2, 4
    image_size, patch_size = 16, 4
    m, lds_size = 6, 3

    img = jax.random.normal(
        key, (batch, channels, image_size, image_size), dtype=jnp.float32)

    module = NonTrainableObsMatrixModule(
        image_size=image_size, patch_size=patch_size, channels=channels,
        m=m, lds_size=lds_size)

    out = jax.block_until_ready(module(img))
    assert out.shape == (batch, m * module.patch_dim, lds_size), out.shape

    # sanity 1: columns are orthonormal (Grassmannian representative)
    gram = jnp.einsum("bij,bik->bjk", out, out)
    assert jnp.allclose(gram, jnp.eye(lds_size)[None], atol=2e-3), "not orthonormal"

    # sanity 2: same column space as the plain-JAX observability matrix
    x = to_patch_embedding(img, patch_size)
    C, A = lds_system_id(x, lds_size)
    blocks, blk = [C], C
    for _ in range(1, m):
        blk = jnp.einsum("bij,bjk->bik", blk, A)
        blocks.append(blk)
    Om_ref = jnp.concatenate(blocks, axis=1)                 # (b, m*pd, n)
    resid = Om_ref - jnp.einsum("bij,bkj,bkl->bil", out, out, Om_ref)
    rel = jnp.linalg.norm(resid) / jnp.linalg.norm(Om_ref)
    assert rel < 2e-3, float(rel)

    print("KERNEL_OK")
</pallas_src>

<mosaic_0001>
module attributes {stable_mosaic.version = 11 : i64} {
  func.func @_om_kernel(%arg0: i32, %arg1: memref<2x192xf32, #tpu.memory_space<vmem>>, %arg2: memref<2x6x9xf32, #tpu.memory_space<vmem>>, %arg3: memref<2x18x64xf32, #tpu.memory_space<vmem>>) attributes {dimension_semantics = [#tpu.dimension_semantics<parallel>], iteration_bounds = array<i64: 1>, scalar_prefetch = 0 : i64, scratch_operands = 0 : i64, tpu.core_type = #tpu.core_type<tc>, window_params = [{transform_indices = @transform_0, window_bounds = array<i64: 2, 192>}, {transform_indices = @transform_1, window_bounds = array<i64: 2, 6, 9>}, {transform_indices = @transform_2, window_bounds = array<i64: 2, 18, 64>}]} {
    %c0 = arith.constant 0 : index
    %c0_0 = arith.constant 0 : index
    %0 = vector.load %arg1[%c0, %c0_0] : memref<2x192xf32, #tpu.memory_space<vmem>>, vector<2x192xf32>
    %c0_1 = arith.constant 0 : index
    %c0_2 = arith.constant 0 : index
    %c0_3 = arith.constant 0 : index
    %1 = vector.load %arg2[%c0_1, %c0_2, %c0_3] : memref<2x6x9xf32, #tpu.memory_space<vmem>>, vector<2x6x9xf32>
    %2 = vector.extract_strided_slice %0 {offsets = [0, 0], sizes = [2, 64], strides = [1, 1]} : vector<2x192xf32> to vector<2x64xf32>
    %3 = vector.shape_cast %2 : vector<2x64xf32> to vector<2x1x64xf32>
    %4 = vector.extract_strided_slice %0 {offsets = [0, 64], sizes = [2, 64], strides = [1, 1]} : vector<2x192xf32> to vector<2x64xf32>
    %5 = vector.shape_cast %4 : vector<2x64xf32> to vector<2x1x64xf32>
    %6 = vector.extract_strided_slice %0 {offsets = [0, 128], sizes = [2, 64], strides = [1, 1]} : vector<2x192xf32> to vector<2x64xf32>
    %7 = vector.shape_cast %6 : vector<2x64xf32> to vector<2x1x64xf32>
    %8 = vector.extract_strided_slice %1 {offsets = [0, 0, 0], sizes = [2, 6, 1], strides = [1, 1, 1]} : vector<2x6x9xf32> to vector<2x6x1xf32>
    %9 = vector.shape_cast %8 : vector<2x6x1xf32> to vector<2x6xf32>
    %10 = vector.shape_cast %9 : vector<2x6xf32> to vector<2x6x1xf32>
    %11 = vector.broadcast %10 : vector<2x6x1xf32> to vector<2x6x64xf32>
    %12 = vector.broadcast %3 : vector<2x1x64xf32> to vector<2x6x64xf32>
    %13 = arith.mulf %11, %12 : vector<2x6x64xf32>
    %14 = vector.extract_strided_slice %1 {offsets = [0, 0, 1], sizes = [2, 6, 1], strides = [1, 1, 1]} : vector<2x6x9xf32> to vector<2x6x1xf32>
    %15 = vector.shape_cast %14 : vector<2x6x1xf32> to vector<2x6xf32>
    %16 = vector.shape_cast %15 : vector<2x6xf32> to vector<2x6x1xf32>
    %17 = vector.broadcast %16 : vector<2x6x1xf32> to vector<2x6x64xf32>
    %18 = vector.broadcast %5 : vector<2x1x64xf32> to vector<2x6x64xf32>
    %19 = arith.mulf %17, %18 : vector<2x6x64xf32>
    %20 = arith.addf %13, %19 : vector<2x6x64xf32>
    %21 = vector.extract_strided_slice %1 {offsets = [0, 0, 2], sizes = [2, 6, 1], strides = [1, 1, 1]} : vector<2x6x9xf32> to vector<2x6x1xf32>
    %22 = vector.shape_cast %21 : vector<2x6x1xf32> to vector<2x6xf32>
    %23 = vector.shape_cast %22 : vector<2x6xf32> to vector<2x6x1xf32>
    %24 = vector.broadcast %23 : vector<2x6x1xf32> to vector<2x6x64xf32>
    %25 = vector.broadcast %7 : vector<2x1x64xf32> to vector<2x6x64xf32>
    %26 = arith.mulf %24, %25 : vector<2x6x64xf32>
    %27 = arith.addf %20, %26 : vector<2x6x64xf32>
    %28 = vector.extract_strided_slice %1 {offsets = [0, 0, 3], sizes = [2, 6, 1], strides = [1, 1, 1]} : vector<2x6x9xf32> to vector<2x6x1xf32>
    %29 = vector.shape_cast %28 : vector<2x6x1xf32> to vector<2x6xf32>
    %30 = vector.shape_cast %29 : vector<2x6xf32> to vector<2x6x1xf32>
    %31 = vector.broadcast %30 : vector<2x6x1xf32> to vector<2x6x64xf32>
    %32 = vector.broadcast %3 : vector<2x1x64xf32> to vector<2x6x64xf32>
    %33 = arith.mulf %31, %32 : vector<2x6x64xf32>
    %34 = vector.extract_strided_slice %1 {offsets = [0, 0, 4], sizes = [2, 6, 1], strides = [1, 1, 1]} : vector<2x6x9xf32> to vector<2x6x1xf32>
    %35 = vector.shape_cast %34 : vector<2x6x1xf32> to vector<2x6xf32>
    %36 = vector.shape_cast %35 : vector<2x6xf32> to vector<2x6x1xf32>
    %37 = vector.broadcast %36 : vector<2x6x1xf32> to vector<2x6x64xf32>
    %38 = vector.broadcast %5 : vector<2x1x64xf32> to vector<2x6x64xf32>
    %39 = arith.mulf %37, %38 : vector<2x6x64xf32>
    %40 = arith.addf %33, %39 : vector<2x6x64xf32>
    %41 = vector.extract_strided_slice %1 {offsets = [0, 0, 5], sizes = [2, 6, 1], strides = [1, 1, 1]} : vector<2x6x9xf32> to vector<2x6x1xf32>
    %42 = vector.shape_cast %41 : vector<2x6x1xf32> to vector<2x6xf32>
    %43 = vector.shape_cast %42 : vector<2x6xf32> to vector<2x6x1xf32>
    %44 = vector.broadcast %43 : vector<2x6x1xf32> to vector<2x6x64xf32>
    %45 = vector.broadcast %7 : vector<2x1x64xf32> to vector<2x6x64xf32>
    %46 = arith.mulf %44, %45 : vector<2x6x64xf32>
    %47 = arith.addf %40, %46 : vector<2x6x64xf32>
    %48 = vector.extract_strided_slice %1 {offsets = [0, 0, 6], sizes = [2, 6, 1], strides = [1, 1, 1]} : vector<2x6x9xf32> to vector<2x6x1xf32>
    %49 = vector.shape_cast %48 : vector<2x6x1xf32> to vector<2x6xf32>
    %50 = vector.shape_cast %49 : vector<2x6xf32> to vector<2x6x1xf32>
    %51 = vector.broadcast %50 : vector<2x6x1xf32> to vector<2x6x64xf32>
    %52 = vector.broadcast %3 : vector<2x1x64xf32> to vector<2x6x64xf32>
    %53 = arith.mulf %51, %52 : vector<2x6x64xf32>
    %54 = vector.extract_strided_slice %1 {offsets = [0, 0, 7], sizes = [2, 6, 1], strides = [1, 1, 1]} : vector<2x6x9xf32> to vector<2x6x1xf32>
    %55 = vector.shape_cast %54 : vector<2x6x1xf32> to vector<2x6xf32>
    %56 = vector.shape_cast %55 : vector<2x6xf32> to vector<2x6x1xf32>
    %57 = vector.broadcast %56 : vector<2x6x1xf32> to vector<2x6x64xf32>
    %58 = vector.broadcast %5 : vector<2x1x64xf32> to vector<2x6x64xf32>
    %59 = arith.mulf %57, %58 : vector<2x6x64xf32>
    %60 = arith.addf %53, %59 : vector<2x6x64xf32>
    %61 = vector.extract_strided_slice %1 {offsets = [0, 0, 8], sizes = [2, 6, 1], strides = [1, 1, 1]} : vector<2x6x9xf32> to vector<2x6x1xf32>
    %62 = vector.shape_cast %61 : vector<2x6x1xf32> to vector<2x6xf32>
    %63 = vector.shape_cast %62 : vector<2x6xf32> to vector<2x6x1xf32>
    %64 = vector.broadcast %63 : vector<2x6x1xf32> to vector<2x6x64xf32>
    %65 = vector.broadcast %7 : vector<2x1x64xf32> to vector<2x6x64xf32>
    %66 = arith.mulf %64, %65 : vector<2x6x64xf32>
    %67 = arith.addf %60, %66 : vector<2x6x64xf32>
    %68 = arith.mulf %27, %27 : vector<2x6x64xf32>
    %cst = arith.constant dense<0.000000e+00> : vector<2x6xf32>
    %69 = vector.multi_reduction <add>, %68, %cst [2] : vector<2x6x64xf32> to vector<2x6xf32>
    %70 = vector.shape_cast %69 : vector<2x6xf32> to vector<2x6x1xf32>
    %cst_4 = arith.constant dense<0.000000e+00> : vector<2x1xf32>
    %71 = vector.multi_reduction <add>, %70, %cst_4 [1] : vector<2x6x1xf32> to vector<2x1xf32>
    %72 = vector.shape_cast %71 : vector<2x1xf32> to vector<2x1x1xf32>
    %73 = arith.mulf %47, %27 : vector<2x6x64xf32>
    %cst_5 = arith.constant dense<0.000000e+00> : vector<2x6xf32>
    %74 = vector.multi_reduction <add>, %73, %cst_5 [2] : vector<2x6x64xf32> to vector<2x6xf32>
    %75 = vector.shape_cast %74 : vector<2x6xf32> to vector<2x6x1xf32>
    %cst_6 = arith.constant dense<0.000000e+00> : vector<2x1xf32>
    %76 = vector.multi_reduction <add>, %75, %cst_6 [1] : vector<2x6x1xf32> to vector<2x1xf32>
    %77 = vector.shape_cast %76 : vector<2x1xf32> to vector<2x1x1xf32>
    %78 = arith.mulf %47, %47 : vector<2x6x64xf32>
    %cst_7 = arith.constant dense<0.000000e+00> : vector<2x6xf32>
    %79 = vector.multi_reduction <add>, %78, %cst_7 [2] : vector<2x6x64xf32> to vector<2x6xf32>
    %80 = vector.shape_cast %79 : vector<2x6xf32> to vector<2x6x1xf32>
    %cst_8 = arith.constant dense<0.000000e+00> : vector<2x1xf32>
    %81 = vector.multi_reduction <add>, %80, %cst_8 [1] : vector<2x6x1xf32> to vector<2x1xf32>
    %82 = vector.shape_cast %81 : vector<2x1xf32> to vector<2x1x1xf32>
    %83 = arith.mulf %67, %27 : vector<2x6x64xf32>
    %cst_9 = arith.constant dense<0.000000e+00> : vector<2x6xf32>
    %84 = vector.multi_reduction <add>, %83, %cst_9 [2] : vector<2x6x64xf32> to vector<2x6xf32>
    %85 = vector.shape_cast %84 : vector<2x6xf32> to vector<2x6x1xf32>
    %cst_10 = arith.constant dense<0.000000e+00> : vector<2x1xf32>
    %86 = vector.multi_reduction <add>, %85, %cst_10 [1] : vector<2x6x1xf32> to vector<2x1xf32>
    %87 = vector.shape_cast %86 : vector<2x1xf32> to vector<2x1x1xf32>
    %88 = arith.mulf %67, %47 : vector<2x6x64xf32>
    %cst_11 = arith.constant dense<0.000000e+00> : vector<2x6xf32>
    %89 = vector.multi_reduction <add>, %88, %cst_11 [2] : vector<2x6x64xf32> to vector<2x6xf32>
    %90 = vector.shape_cast %89 : vector<2x6xf32> to vector<2x6x1xf32>
    %cst_12 = arith.constant dense<0.000000e+00> : vector<2x1xf32>
    %91 = vector.multi_reduction <add>, %90, %cst_12 [1] : vector<2x6x1xf32> to vector<2x1xf32>
    %92 = vector.shape_cast %91 : vector<2x1xf32> to vector<2x1x1xf32>
    %93 = arith.mulf %67, %67 : vector<2x6x64xf32>
    %cst_13 = arith.constant dense<0.000000e+00> : vector<2x6xf32>
    %94 = vector.multi_reduction <add>, %93, %cst_13 [2] : vector<2x6x64xf32> to vector<2x6xf32>
    %95 = vector.shape_cast %94 : vector<2x6xf32> to vector<2x6x1xf32>
    %cst_14 = arith.constant dense<0.000000e+00> : vector<2x1xf32>
    %96 = vector.multi_reduction <add>, %95, %cst_14 [1] : vector<2x6x1xf32> to vector<2x1xf32>
    %97 = vector.shape_cast %96 : vector<2x1xf32> to vector<2x1x1xf32>
    %98 = arith.addf %72, %82 : vector<2x1x1xf32>
    %99 = arith.addf %98, %97 : vector<2x1x1xf32>
    %cst_15 = arith.constant 1.000000e-07 : f32
    %100 = vector.broadcast %cst_15 : f32 to vector<2x1x1xf32>
    %101 = arith.mulf %100, %99 : vector<2x1x1xf32>
    %cst_16 = arith.constant 1.000000e-30 : f32
    %102 = vector.broadcast %cst_16 : f32 to vector<2x1x1xf32>
    %103 = arith.addf %101, %102 : vector<2x1x1xf32>
    %104 = arith.maximumf %72, %103 : vector<2x1x1xf32>
    %105 = math.sqrt %104 : vector<2x1x1xf32>
    %106 = math.rsqrt %104 : vector<2x1x1xf32>
    %107 = arith.mulf %77, %106 : vector<2x1x1xf32>
    %108 = arith.mulf %87, %106 : vector<2x1x1xf32>
    %109 = arith.mulf %107, %107 : vector<2x1x1xf32>
    %110 = arith.subf %82, %109 : vector<2x1x1xf32>
    %111 = arith.maximumf %110, %103 : vector<2x1x1xf32>
    %112 = math.sqrt %111 : vector<2x1x1xf32>
    %113 = math.rsqrt %111 : vector<2x1x1xf32>
    %114 = arith.mulf %108, %107 : vector<2x1x1xf32>
    %115 = arith.subf %92, %114 : vector<2x1x1xf32>
    %116 = arith.mulf %115, %113 : vector<2x1x1xf32>
    %117 = arith.mulf %108, %108 : vector<2x1x1xf32>
    %118 = arith.subf %97, %117 : vector<2x1x1xf32>
    %119 = arith.mulf %116, %116 : vector<2x1x1xf32>
    %120 = arith.subf %118, %119 : vector<2x1x1xf32>
    %121 = arith.maximumf %120, %103 : vector<2x1x1xf32>
    %122 = math.sqrt %121 : vector<2x1x1xf32>
    %cst_17 = arith.constant 1.000000e+00 : f32
    %123 = vector.broadcast %cst_17 : f32 to vector<2x1x1xf32>
    %124 = arith.divf %123, %105 : vector<2x1x1xf32>
    %cst_18 = arith.constant 1.000000e+00 : f32
    %125 = vector.broadcast %cst_18 : f32 to vector<2x1x1xf32>
    %126 = arith.divf %125, %112 : vector<2x1x1xf32>
    %cst_19 = arith.constant 1.000000e+00 : f32
    %127 = vector.broadcast %cst_19 : f32 to vector<2x1x1xf32>
    %128 = arith.divf %127, %122 : vector<2x1x1xf32>
    %129 = arith.mulf %107, %124 : vector<2x1x1xf32>
    %cst_20 = arith.constant 0.000000e+00 : f32
    %130 = vector.broadcast %cst_20 : f32 to vector<2x1x1xf32>
    %131 = arith.subf %130, %129 : vector<2x1x1xf32>
    %132 = arith.mulf %131, %126 : vector<2x1x1xf32>
    %133 = arith.mulf %108, %124 : vector<2x1x1xf32>
    %134 = arith.mulf %116, %132 : vector<2x1x1xf32>
    %135 = arith.addf %133, %134 : vector<2x1x1xf32>
    %cst_21 = arith.constant 0.000000e+00 : f32
    %136 = vector.broadcast %cst_21 : f32 to vector<2x1x1xf32>
    %137 = arith.subf %136, %135 : vector<2x1x1xf32>
    %138 = arith.mulf %137, %128 : vector<2x1x1xf32>
    %139 = arith.mulf %116, %126 : vector<2x1x1xf32>
    %cst_22 = arith.constant 0.000000e+00 : f32
    %140 = vector.broadcast %cst_22 : f32 to vector<2x1x1xf32>
    %141 = arith.subf %140, %139 : vector<2x1x1xf32>
    %142 = arith.mulf %141, %128 : vector<2x1x1xf32>
    %143 = arith.mulf %124, %72 : vector<2x1x1xf32>
    %144 = arith.mulf %143, %124 : vector<2x1x1xf32>
    %145 = arith.mulf %132, %72 : vector<2x1x1xf32>
    %146 = arith.mulf %145, %124 : vector<2x1x1xf32>
    %147 = arith.mulf %126, %77 : vector<2x1x1xf32>
    %148 = arith.mulf %147, %124 : vector<2x1x1xf32>
    %149 = arith.addf %146, %148 : vector<2x1x1xf32>
    %150 = arith.mulf %132, %72 : vector<2x1x1xf32>
    %151 = arith.mulf %150, %132 : vector<2x1x1xf32>
    %152 = arith.mulf %132, %77 : vector<2x1x1xf32>
    %153 = arith.mulf %152, %126 : vector<2x1x1xf32>
    %154 = arith.addf %151, %153 : vector<2x1x1xf32>
    %155 = arith.mulf %126, %77 : vector<2x1x1xf32>
    %156 = arith.mulf %155, %132 : vector<2x1x1xf32>
    %157 = arith.addf %154, %156 : vector<2x1x1xf32>
    %158 = arith.mulf %126, %82 : vector<2x1x1xf32>
    %159 = arith.mulf %158, %126 : vector<2x1x1xf32>
    %160 = arith.addf %157, %159 : vector<2x1x1xf32>
    %161 = arith.mulf %138, %72 : vector<2x1x1xf32>
    %162 = arith.mulf %161, %124 : vector<2x1x1xf32>
    %163 = arith.mulf %142, %77 : vector<2x1x1xf32>
    %164 = arith.mulf %163, %124 : vector<2x1x1xf32>
    %165 = arith.addf %162, %164 : vector<2x1x1xf32>
    %166 = arith.mulf %128, %87 : vector<2x1x1xf32>
    %167 = arith.mulf %166, %124 : vector<2x1x1xf32>
    %168 = arith.addf %165, %167 : vector<2x1x1xf32>
    %169 = arith.mulf %138, %72 : vector<2x1x1xf32>
    %170 = arith.mulf %169, %132 : vector<2x1x1xf32>
    %171 = arith.mulf %138, %77 : vector<2x1x1xf32>
    %172 = arith.mulf %171, %126 : vector<2x1x1xf32>
    %173 = arith.addf %170, %172 : vector<2x1x1xf32>
    %174 = arith.mulf %142, %77 : vector<2x1x1xf32>
    %175 = arith.mulf %174, %132 : vector<2x1x1xf32>
    %176 = arith.addf %173, %175 : vector<2x1x1xf32>
    %177 = arith.mulf %142, %82 : vector<2x1x1xf32>
    %178 = arith.mulf %177, %126 : vector<2x1x1xf32>
    %179 = arith.addf %176, %178 : vector<2x1x1xf32>
    %180 = arith.mulf %128, %87 : vector<2x1x1xf32>
    %181 = arith.mulf %180, %132 : vector<2x1x1xf32>
    %182 = arith.addf %179, %181 : vector<2x1x1xf32>
    %183 = arith.mulf %128, %92 : vector<2x1x1xf32>
    %184 = arith.mulf %183, %126 : vector<2x1x1xf32>
    %185 = arith.addf %182, %184 : vector<2x1x1xf32>
    %186 = arith.mulf %138, %72 : vector<2x1x1xf32>
    %187 = arith.mulf %186, %138 : vector<2x1x1xf32>
    %188 = arith.mulf %138, %77 : vector<2x1x1xf32>
    %189 = arith.mulf %188, %142 : vector<2x1x1xf32>
    %190 = arith.addf %187, %189 : vector<2x1x1xf32>
    %191 = arith.mulf %138, %87 : vector<2x1x1xf32>
    %192 = arith.mulf %191, %128 : vector<2x1x1xf32>
    %193 = arith.addf %190, %192 : vector<2x1x1xf32>
    %194 = arith.mulf %142, %77 : vector<2x1x1xf32>
    %195 = arith.mulf %194, %138 : vector<2x1x1xf32>
    %196 = arith.addf %193, %195 : vector<2x1x1xf32>
    %197 = arith.mulf %142, %82 : vector<2x1x1xf32>
    %198 = arith.mulf %197, %142 : vector<2x1x1xf32>
    %199 = arith.addf %196, %198 : vector<2x1x1xf32>
    %200 = arith.mulf %142, %92 : vector<2x1x1xf32>
    %201 = arith.mulf %200, %128 : vector<2x1x1xf32>
    %202 = arith.addf %199, %201 : vector<2x1x1xf32>
    %203 = arith.mulf %128, %87 : vector<2x1x1xf32>
    %204 = arith.mulf %203, %138 : vector<2x1x1xf32>
    %205 = arith.addf %202, %204 : vector<2x1x1xf32>
    %206 = arith.mulf %128, %92 : vector<2x1x1xf32>
    %207 = arith.mulf %206, %142 : vector<2x1x1xf32>
    %208 = arith.addf %205, %207 : vector<2x1x1xf32>
    %209 = arith.mulf %128, %97 : vector<2x1x1xf32>
    %210 = arith.mulf %209, %128 : vector<2x1x1xf32>
    %211 = arith.addf %208, %210 : vector<2x1x1xf32>
    %212 = arith.addf %144, %160 : vector<2x1x1xf32>
    %213 = arith.addf %212, %211 : vector<2x1x1xf32>
    %cst_23 = arith.constant 1.000000e-07 : f32
    %214 = vector.broadcast %cst_23 : f32 to vector<2x1x1xf32>
    %215 = arith.mulf %214, %213 : vector<2x1x1xf32>
    %cst_24 = arith.constant 1.000000e-30 : f32
    %216 = vector.broadcast %cst_24 : f32 to vector<2x1x1xf32>
    %217 = arith.addf %215, %216 : vector<2x1x1xf32>
    %218 = arith.maximumf %144, %217 : vector<2x1x1xf32>
    %219 = math.sqrt %218 : vector<2x1x1xf32>
    %220 = math.rsqrt %218 : vector<2x1x1xf32>
    %221 = arith.mulf %149, %220 : vector<2x1x1xf32>
    %222 = arith.mulf %168, %220 : vector<2x1x1xf32>
    %223 = arith.mulf %221, %221 : vector<2x1x1xf32>
    %224 = arith.subf %160, %223 : vector<2x1x1xf32>
    %225 = arith.maximumf %224, %217 : vector<2x1x1xf32>
    %226 = math.sqrt %225 : vector<2x1x1xf32>
    %227 = math.rsqrt %225 : vector<2x1x1xf32>
    %228 = arith.mulf %222, %221 : vector<2x1x1xf32>
    %229 = arith.subf %185, %228 : vector<2x1x1xf32>
    %230 = arith.mulf %229, %227 : vector<2x1x1xf32>
    %231 = arith.mulf %222, %222 : vector<2x1x1xf32>
    %232 = arith.subf %211, %231 : vector<2x1x1xf32>
    %233 = arith.mulf %230, %230 : vector<2x1x1xf32>
    %234 = arith.subf %232, %233 : vector<2x1x1xf32>
    %235 = arith.maximumf %234, %217 : vector<2x1x1xf32>
    %236 = math.sqrt %235 : vector<2x1x1xf32>
    %cst_25 = arith.constant 1.000000e+00 : f32
    %237 = vector.broadcast %cst_25 : f32 to vector<2x1x1xf32>
    %238 = arith.divf %237, %219 : vector<2x1x1xf32>
    %cst_26 = arith.constant 1.000000e+00 : f32
    %239 = vector.broadcast %cst_26 : f32 to vector<2x1x1xf32>
    %240 = arith.divf %239, %226 : vector<2x1x1xf32>
    %cst_27 = arith.constant 1.000000e+00 : f32
    %241 = vector.broadcast %cst_27 : f32 to vector<2x1x1xf32>
    %242 = arith.divf %241, %236 : vector<2x1x1xf32>
    %243 = arith.mulf %221, %238 : vector<2x1x1xf32>
    %cst_28 = arith.constant 0.000000e+00 : f32
    %244 = vector.broadcast %cst_28 : f32 to vector<2x1x1xf32>
    %245 = arith.subf %244, %243 : vector<2x1x1xf32>
    %246 = arith.mulf %245, %240 : vector<2x1x1xf32>
    %247 = arith.mulf %222, %238 : vector<2x1x1xf32>
    %248 = arith.mulf %230, %246 : vector<2x1x1xf32>
    %249 = arith.addf %247, %248 : vector<2x1x1xf32>
    %cst_29 = arith.constant 0.000000e+00 : f32
    %250 = vector.broadcast %cst_29 : f32 to vector<2x1x1xf32>
    %251 = arith.subf %250, %249 : vector<2x1x1xf32>
    %252 = arith.mulf %251, %242 : vector<2x1x1xf32>
    %253 = arith.mulf %230, %240 : vector<2x1x1xf32>
    %cst_30 = arith.constant 0.000000e+00 : f32
    %254 = vector.broadcast %cst_30 : f32 to vector<2x1x1xf32>
    %255 = arith.subf %254, %253 : vector<2x1x1xf32>
    %256 = arith.mulf %255, %242 : vector<2x1x1xf32>
    %257 = arith.mulf %238, %124 : vector<2x1x1xf32>
    %258 = arith.mulf %246, %124 : vector<2x1x1xf32>
    %259 = arith.mulf %240, %132 : vector<2x1x1xf32>
    %260 = arith.addf %258, %259 : vector<2x1x1xf32>
    %261 = arith.mulf %240, %126 : vector<2x1x1xf32>
    %262 = arith.mulf %252, %124 : vector<2x1x1xf32>
    %263 = arith.mulf %256, %132 : vector<2x1x1xf32>
    %264 = arith.addf %262, %263 : vector<2x1x1xf32>
    %265 = arith.mulf %242, %138 : vector<2x1x1xf32>
    %266 = arith.addf %264, %265 : vector<2x1x1xf32>
    %267 = arith.mulf %256, %126 : vector<2x1x1xf32>
    %268 = arith.mulf %242, %142 : vector<2x1x1xf32>
    %269 = arith.addf %267, %268 : vector<2x1x1xf32>
    %270 = arith.mulf %242, %128 : vector<2x1x1xf32>
    %271 = vector.broadcast %257 : vector<2x1x1xf32> to vector<2x6x64xf32>
    %272 = arith.mulf %271, %27 : vector<2x6x64xf32>
    %c0_31 = arith.constant 0 : index
    %c0_32 = arith.constant 0 : index
    %c0_33 = arith.constant 0 : index
    %273 = vector.load %arg3[%c0_31, %c0_32, %c0_33] : memref<2x18x64xf32, #tpu.memory_space<vmem>>, vector<2x6x64xf32>
    tpu.vector_store %arg3[%c0_31, %c0_32, %c0_33], %272 {strides = array<i32>} : memref<2x18x64xf32, #tpu.memory_space<vmem>>, vector<2x6x64xf32>,
    %274 = vector.broadcast %260 : vector<2x1x1xf32> to vector<2x6x64xf32>
    %275 = arith.mulf %274, %27 : vector<2x6x64xf32>
    %276 = vector.broadcast %261 : vector<2x1x1xf32> to vector<2x6x64xf32>
    %277 = arith.mulf %276, %47 : vector<2x6x64xf32>
    %278 = arith.addf %275, %277 : vector<2x6x64xf32>
    %c0_34 = arith.constant 0 : index
    %c6 = arith.constant 6 : index
    %c0_35 = arith.constant 0 : index
    %279 = vector.load %arg3[%c0_34, %c6, %c0_35] : memref<2x18x64xf32, #tpu.memory_space<vmem>>, vector<2x6x64xf32>
    tpu.vector_store %arg3[%c0_34, %c6, %c0_35], %278 {strides = array<i32>} : memref<2x18x64xf32, #tpu.memory_space<vmem>>, vector<2x6x64xf32>,
    %280 = vector.broadcast %266 : vector<2x1x1xf32> to vector<2x6x64xf32>
    %281 = arith.mulf %280, %27 : vector<2x6x64xf32>
    %282 = vector.broadcast %269 : vector<2x1x1xf32> to vector<2x6x64xf32>
    %283 = arith.mulf %282, %47 : vector<2x6x64xf32>
    %284 = arith.addf %281, %283 : vector<2x6x64xf32>
    %285 = vector.broadcast %270 : vector<2x1x1xf32> to vector<2x6x64xf32>
    %286 = arith.mulf %285, %67 : vector<2x6x64xf32>
    %287 = arith.addf %284, %286 : vector<2x6x64xf32>
    %c0_36 = arith.constant 0 : index
    %c12 = arith.constant 12 : index
    %c0_37 = arith.constant 0 : index
    %288 = vector.load %arg3[%c0_36, %c12, %c0_37] : memref<2x18x64xf32, #tpu.memory_space<vmem>>, vector<2x6x64xf32>
    tpu.vector_store %arg3[%c0_36, %c12, %c0_37], %287 {strides = array<i32>} : memref<2x18x64xf32, #tpu.memory_space<vmem>>, vector<2x6x64xf32>,
    return
  }
  func.func @transform_0(%arg0: i32) -> (i32, i32) {
    %c0_i32 = arith.constant 0 : i32
    %c0_i32_0 = arith.constant 0 : i32
    return %arg0, %c0_i32 : i32, i32
  }
  func.func @transform_1(%arg0: i32) -> (i32, i32, i32) {
    %c0_i32 = arith.constant 0 : i32
    %c0_i32_0 = arith.constant 0 : i32
    %c0_i32_1 = arith.constant 0 : i32
    return %arg0, %c0_i32, %c0_i32_0 : i32, i32, i32
  }
  func.func @transform_2(%arg0: i32) -> (i32, i32, i32) {
    %c0_i32 = arith.constant 0 : i32
    %c0_i32_0 = arith.constant 0 : i32
    %c0_i32_1 = arith.constant 0 : i32
    return %arg0, %c0_i32, %c0_i32_0 : i32, i32, i32
  }
}

</mosaic_0001>

<bundles_post_ra>
// kernel: tpu_custom_call.1
= control target key start
LH: loop header
LB: loop body
LE: loop exit
PB: predicated region body
PF: predicated region fallthrough
CT: control target
= control target key end

     0   :  { %v784_v0 = vmov 4   ;;  %v785_v1 = vmov 1   ;;  %v786_v4 = vmov 7   ;;  %v787_v5 = vmov 0   ;;  %s1320_s1 = inlined_call_operand.vmem [shape: f32[2,6,9], index: 1, kind: input, shape index: {}]   ;;  %s1321_s0 = inlined_call_operand.vmem [shape: f32[2,192], index: 0, kind: input, shape index: {}]   ;;  %s1322_s2 = inlined_call_operand.vmem [shape: f32[2,18,64], index: 2, kind: output, shape index: {}]  }
   0x1   :  { %723 = vset.pattern.permute.xlu1 %v784_v0  ;;  %722 = vset.pattern.permute.xlu0 %v785_v1  ;;  %v12_v2 = vld [vmem:[%s1320_s1] sm:$0x3f]  ;;  %v13_v3 = vld [vmem:[%s1320_s1 + $0x8] sm:$0x3f]  ;;  %v788_v6 = vmov 3   ;;  %v789_v7 = vmov 2   ;;  %v35_v8 = vlaneseq }
   0x2   :  { %100 = vperm.xlu1 %723, %v12_v2   ;;  %48 = vperm.xlu0 %722, %v12_v2   ;;  %v790_v9 = vmov 5   ;;  %v711_v11 = vld.sshfl [vmem:[%s1321_s0] sm:$0x33 pattern:$0x75316420]  ;;  %v791_v15 = vmov 8  }
   0x3   :  { %v36_v10 = vshrl.u32 %v35_v8, 7  ;;  %v22_v12 = vcombine.high %v711_v11, %v711_v11  ;;  %v23_v17 = vrot.slane %v711_v11, 1  ;;  %v792_v19 = vmov 6   ;;  %s793_s0 = smov 64  }
   0x4   :  { %vm175_vm0 = vcmask 521216   ;;  %vm182_vm1 = vcmask 1045504  }
   0x5   :  { %v37_v13 = vsub.s32 0, %v36_v10  ;;  %v24_v14 = vrot.slane %v22_v12, 1 }
   0x6   :  { %104 = vperm.xlu1 %723, %v13_v3   ;;  %52 = vperm.xlu0 %722, %v13_v3  }
   0x7   :  { %v818_v16 = vrot.slane %v24_v14, %v37_v13  ;;  %v820_v18 = vrot.slane %v23_v17, %v37_v13  ;;  %v38_v20 = vrot.slane %v711_v11, %v37_v13  ;;  %v42_v24 = vrot.slane %v22_v12, %v37_v13 }
   0xa   :  { %724 = vset.pattern.permute.xlu0 %v786_v4  ;;  %725 = vset.pattern.permute.xlu1 %v786_v4 }
   0xb   :  { %142 = vperm.xlu0 %724, %v12_v2   ;;  %146 = vperm.xlu1 %725, %v13_v3  }
   0xf   :  { %726 = vset.pattern.permute.xlu1 %v787_v5  ;;  %727 = vset.pattern.permute.xlu0 %v787_v5 }
  0x10   :  { %27 = vperm.xlu1 %726, %v12_v2   ;;  %32 = vperm.xlu0 %727, %v13_v3  }
  0x14   :  { %728 = vset.pattern.permute.xlu1 %v788_v6  ;;  %729 = vset.pattern.permute.xlu0 %v789_v7 }
  0x15   :  { %90 = vperm.xlu1 %728, %v12_v2   ;;  %68 = vperm.xlu0 %729, %v12_v2  }
  0x19   :  { %94 = vperm.xlu1 %728, %v13_v3   ;;  %732 = vset.pattern.permute.xlu0 %v790_v9 }
  0x1a   :  { %124 = vperm.xlu0 %732, %v13_v3  }
  0x1d   :  { %730 = vset.pattern.permute.xlu1 %v789_v7 }
  0x1e   :  { %72 = vperm.xlu1 %730, %v13_v3   ;;  %734 = vset.pattern.permute.xlu0 %v791_v15 }
  0x1f   :  { %162 = vperm.xlu0 %734, %v12_v2  }
  0x22   :  { %731 = vset.pattern.permute.xlu1 %v790_v9 }
  0x23   :  { %120 = vperm.xlu1 %731, %v12_v2  }
  0x27   :  { %733 = vset.pattern.permute.xlu1 %v792_v19 }
  0x28   :  { %132 = vperm.xlu1 %733, %v12_v2  }
  0x2c   :  { %136 = vperm.xlu1 %733, %v13_v3  }
  0x30   :  { %735 = vset.pattern.permute.xlu1 %v791_v15 }
  0x31   :  { %166 = vperm.xlu1 %735, %v13_v3  }
  0x81   :  { %v101_v21 = vpop.permute.xlu1 %100  ;;  %v49_v22 = vpop.permute.xlu0 %48 }
  0x82   :  { %v55_v23 = vmul.f32 %v49_v22, %v38_v20  ;;  %v107_v25 = vmul.f32 %v101_v21, %v38_v20 }
  0x84   :  { %59 = vrot.lane.b32.xlu1 %v55_v23, %s793_s0 }
  0x85   :  { %v53_v26 = vpop.permute.xlu0 %52  ;;  %v105_v27 = vpop.permute.xlu1 %104 }
  0x86   :  { %v56_v28 = vmul.f32 %v53_v26, %v42_v24  ;;  %v108_v29 = vmul.f32 %v105_v27, %v42_v24 }
  0x88   :  { %111 = vrot.lane.b32.xlu1 %v107_v25, %s793_s0  ;;  %61 = vrot.lane.b32.xlu0 %v56_v28, %s793_s0 }
  0x8a   :  { %v143_v30 = vpop.permute.xlu0 %142  ;;  %v147_v31 = vpop.permute.xlu1 %146 }
  0x8b   :  { %v149_v32 = vmul.f32 %v143_v30, %v38_v20  ;;  %v150_v33 = vmul.f32 %v147_v31, %v42_v24 }
  0x8c   :  { %113 = vrot.lane.b32.xlu0 %v108_v29, %s793_s0 }
  0x8d   :  { %153 = vrot.lane.b32.xlu1 %v149_v32, %s793_s0 }
  0x8f   :  { %v28_v34 = vpop.permute.xlu1 %27  ;;  %v33_v39 = vpop.permute.xlu0 %32 }
  0x90   :  { %155 = vrot.lane.b32.xlu0 %v150_v33, %s793_s0  ;;  %v45_v46 = vmul.f32 %v38_v20, %v28_v34  ;;  %v46_v51 = vmul.f32 %v42_v24, %v33_v39 }
  0x94   :  { %v91_v35 = vpop.permute.xlu1 %90  ;;  %v69_v41 = vpop.permute.xlu0 %68 }
  0x95   :  { %v85_v48 = vmul.f32 %v820_v18, %v69_v41  ;;  %v97_v50 = vmul.f32 %v91_v35, %v38_v20 }
  0x98   :  { %v95_v36 = vpop.permute.xlu1 %94 }
  0x99   :  { %v125_v43 = vpop.permute.xlu0 %124  ;;  %v98_v60 = vmul.f32 %v95_v36, %v42_v24 }
  0x9a   :  { %v128_v2 = vmul.f32 %v125_v43, %v818_v16 }
  0x9d   :  { %v73_v37 = vpop.permute.xlu1 %72 }
  0x9e   :  { %v163_v45 = vpop.permute.xlu0 %162  ;;  %v86_v53 = vmul.f32 %v818_v16, %v73_v37 }
  0x9f   :  { %v169_v6 = vmul.f32 %v163_v45, %v820_v18 }
  0xa2   :  { %v121_v38 = vpop.permute.xlu1 %120 }
  0xa3   :  { %v127_v56 = vmul.f32 %v121_v38, %v820_v18 }
  0xa7   :  { %v133_v40 = vpop.permute.xlu1 %132 }
  0xa8   :  { %v139_v0 = vmul.f32 %v133_v40, %v38_v20 }
  0xab   :  { %v137_v42 = vpop.permute.xlu1 %136 }
  0xac   :  { %v140_v8 = vmul.f32 %v137_v42, %v42_v24 }
  0xb0   :  { %v167_v44 = vpop.permute.xlu1 %166 }
  0xb1   :  { %v170_v14 = vmul.f32 %v167_v44, %v818_v16 }
  0xf6   :  { %v60_v47 = vpop.permute.xlu1 %59 }
  0xf7   :  { %v65_v49 = vadd.f32 %v60_v47, %v45_v46 }
  0xf9   :  { %v823_v52 = vadd.f32 %v85_v48, %v65_v49 }
  0xfa   :  { %v112_v54 = vpop.permute.xlu1 %111  ;;  %v62_v55 = vpop.permute.xlu0 %61 }
  0xfb   :  { %v117_v57 = vadd.f32 %v112_v54, %v97_v50  ;;  %v66_v58 = vadd.f32 %v62_v55, %v46_v51  ;;  %v173_v59 = vmul.f32 %v823_v52, %v823_v52 }
  0xfd   :  { %v829_v61 = vadd.f32 %v127_v56, %v117_v57  ;;  %v831_v62 = vadd.f32 %v86_v53, %v66_v58  ;;  %v176_v63 = vsel %vm175_vm0, %v173_v59, 0.0 }
  0xfe   :  { %177 = vadd.xlane.f32.xlu1 %v176_v63  ;;  %v114_v1 = vpop.permute.xlu0 %113 }
  0xff   :  { %v118_v3 = vadd.f32 %v114_v1, %v98_v60  ;;  %v154_v4 = vpop.permute.xlu1 %153  ;;  %v174_v5 = vmul.f32 %v831_v62, %v831_v62  ;;  %v219_v11 = vmul.f32 %v829_v61, %v829_v61  ;;  %v197_v25 = vmul.f32 %v829_v61, %v823_v52 }
 0x100   :  { %v159_v7 = vadd.f32 %v154_v4, %v139_v0 }
 0x101   :  { %v838_v9 = vadd.f32 %v128_v2, %v118_v3  ;;  %v179_v10 = vsel %vm175_vm0, %v174_v5, 0.0  ;;  %v221_v20 = vsel %vm175_vm0, %v219_v11, 0.0  ;;  %v199_v27 = vsel %vm175_vm0, %v197_v25, 0.0 }
 0x102   :  { %v843_v12 = vadd.f32 %v169_v6, %v159_v7  ;;  %v156_v13 = vpop.permute.xlu0 %155  ;;  %180 = vadd.xlane.f32.xlu0 %v179_v10 }
 0x103   :  { %v160_v15 = vadd.f32 %v156_v13, %v140_v8  ;;  %v220_v17 = vmul.f32 %v838_v9, %v838_v9  ;;  %v198_v24 = vmul.f32 %v838_v9, %v831_v62 }
 0x104   :  { %v285_v21 = vmul.f32 %v843_v12, %v843_v12  ;;  %v241_v29 = vmul.f32 %v843_v12, %v823_v52  ;;  %v263_v33 = vmul.f32 %v843_v12, %v829_v61 }
 0x105   :  { %v848_v18 = vadd.f32 %v170_v14, %v160_v15  ;;  %v224_v19 = vsel %vm175_vm0, %v220_v17, 0.0  ;;  %v202_v26 = vsel %vm175_vm0, %v198_v24, 0.0 }
 0x106   :  { %225 = vadd.xlane.f32.xlu1 %v224_v19  ;;  %222 = vadd.xlane.f32.xlu0 %v221_v20  ;;  %v287_v23 = vsel %vm175_vm0, %v285_v21, 0.0  ;;  %v243_v31 = vsel %vm175_vm0, %v241_v29, 0.0  ;;  %v265_v35 = vsel %vm175_vm0, %v263_v33, 0.0 }
 0x107   :  { %v286_v22 = vmul.f32 %v848_v18, %v848_v18  ;;  %v242_v28 = vmul.f32 %v848_v18, %v831_v62  ;;  %v264_v32 = vmul.f32 %v848_v18, %v838_v9 }
 0x109   :  { %v290_v16 = vsel %vm175_vm0, %v286_v22, 0.0  ;;  %v246_v30 = vsel %vm175_vm0, %v242_v28, 0.0  ;;  %v268_v34 = vsel %vm175_vm0, %v264_v32, 0.0 }
 0x10a   :  { %291 = vadd.xlane.f32.xlu1 %v290_v16  ;;  %288 = vadd.xlane.f32.xlu0 %v287_v23 }
 0x10e   :  { %203 = vadd.xlane.f32.xlu1 %v202_v26  ;;  %200 = vadd.xlane.f32.xlu0 %v199_v27 }
 0x112   :  { %247 = vadd.xlane.f32.xlu1 %v246_v30  ;;  %244 = vadd.xlane.f32.xlu0 %v243_v31 }
 0x116   :  { %269 = vadd.xlane.f32.xlu1 %v268_v34  ;;  %266 = vadd.xlane.f32.xlu0 %v265_v35 }
 0x18b   :  { %v178_v36 = vpop.xlane.xlu1 %177 }
 0x18c   :  { %v183_v37 = vsel %vm182_vm1, %v178_v36, 0.0 }
 0x18d   :  { %v184_v38 = vrot.slane %v183_v37, 4 }
 0x18f   :  { %v181_v39 = vpop.xlane.xlu0 %180  ;;  %v185_v42 = vadd.f32 %v184_v38, %v183_v37 }
 0x190   :  { %v190_v40 = vsel %vm182_vm1, %v181_v39, 0.0 }
 0x191   :  { %v191_v41 = vrot.slane %v190_v40, 4  ;;  %v186_v51 = vrot.slane %v185_v42, 2 }
 0x193   :  { %v192_v43 = vadd.f32 %v191_v41, %v190_v40  ;;  %v226_v44 = vpop.xlane.xlu1 %225  ;;  %v223_v45 = vpop.xlane.xlu0 %222  ;;  %v187_v1 = vadd.f32 %v186_v51, %v185_v42 }
 0x194   :  { %v234_v46 = vsel %vm182_vm1, %v226_v44, 0.0  ;;  %v227_v47 = vsel %vm182_vm1, %v223_v45, 0.0 }
 0x195   :  { %v193_v48 = vrot.slane %v192_v43, 2  ;;  %v235_v49 = vrot.slane %v234_v46, 4  ;;  %v228_v50 = vrot.slane %v227_v47, 4  ;;  %v188_v15 = vrot.slane %v187_v1, 1 }
 0x197   :  { %v236_v53 = vadd.f32 %v235_v49, %v234_v46  ;;  %v229_v54 = vadd.f32 %v228_v50, %v227_v47  ;;  %v292_v55 = vpop.xlane.xlu1 %291  ;;  %v289_v56 = vpop.xlane.xlu0 %288  ;;  %v194_v59 = vadd.f32 %v193_v48, %v192_v43  ;;  %v890_v26 = vadd.f32 %v188_v15, %v187_v1 }
 0x198   :  { %v300_v57 = vsel %vm182_vm1, %v292_v55, 0.0  ;;  %v293_v58 = vsel %vm182_vm1, %v289_v56, 0.0 }
 0x199   :  { %v237_v60 = vrot.slane %v236_v53, 2  ;;  %v230_v63 = vrot.slane %v229_v54, 2  ;;  %v301_v0 = vrot.slane %v300_v57, 4  ;;  %v294_v2 = vrot.slane %v293_v58, 4 }
 0x19a   :  { %v195_v8 = vrot.slane %v194_v59, 1 }
 0x19b   :  { %v238_v3 = vadd.f32 %v237_v60, %v236_v53  ;;  %v231_v4 = vadd.f32 %v230_v63, %v229_v54  ;;  %v302_v5 = vadd.f32 %v301_v0, %v300_v57  ;;  %v295_v6 = vadd.f32 %v294_v2, %v293_v58  ;;  %v204_v7 = vpop.xlane.xlu1 %203  ;;  %v201_v14 = vpop.xlane.xlu0 %200 }
 0x19c   :  { %v212_v21 = vsel %vm182_vm1, %v204_v7, 0.0  ;;  %v205_v23 = vsel %vm182_vm1, %v201_v14, 0.0  ;;  %v888_v24 = vadd.f32 %v195_v8, %v194_v59 }
 0x19d   :  { %v239_v10 = vrot.slane %v238_v3, 1  ;;  %v232_v11 = vrot.slane %v231_v4, 1  ;;  %v303_v13 = vrot.slane %v302_v5, 2  ;;  %v296_v17 = vrot.slane %v295_v6, 2 }
 0x19e   :  { %v213_v28 = vrot.slane %v212_v21, 4  ;;  %v206_v31 = vrot.slane %v205_v23, 4 }
 0x19f   :  { %v882_v19 = vadd.f32 %v239_v10, %v238_v3  ;;  %v304_v20 = vadd.f32 %v303_v13, %v302_v5  ;;  %v885_v22 = vadd.f32 %v232_v11, %v231_v4  ;;  %v297_v16 = vadd.f32 %v296_v17, %v295_v6  ;;  %v248_v35 = vpop.xlane.xlu1 %247  ;;  %v245_v38 = vpop.xlane.xlu0 %244 }
 0x1a0   :  { %v214_v37 = vadd.f32 %v213_v28, %v212_v21  ;;  %v207_v40 = vadd.f32 %v206_v31, %v205_v23  ;;  %v256_v42 = vsel %vm182_vm1, %v248_v35, 0.0  ;;  %v249_v44 = vsel %vm182_vm1, %v245_v38, 0.0 }
 0x1a1   :  { %v305_v25 = vrot.slane %v304_v20, 1  ;;  %v298_v27 = vrot.slane %v297_v16, 1  ;;  %v308_v30 = vadd.f32 %v882_v19, %v888_v24  ;;  %v307_v32 = vadd.f32 %v885_v22, %v890_v26 }
 0x1a2   :  { %v215_v46 = vrot.slane %v214_v37, 2  ;;  %v208_v48 = vrot.slane %v207_v40, 2  ;;  %v257_v49 = vrot.slane %v256_v42, 4  ;;  %v250_v51 = vrot.slane %v249_v44, 4 }
 0x1a3   :  { %v892_v29 = vadd.f32 %v305_v25, %v304_v20  ;;  %v898_v33 = vadd.f32 %v298_v27, %v297_v16  ;;  %v270_v53 = vpop.xlane.xlu1 %269  ;;  %v267_v55 = vpop.xlane.xlu0 %266 }
 0x1a4   :  { %v216_v54 = vadd.f32 %v215_v46, %v214_v37  ;;  %v209_v56 = vadd.f32 %v208_v48, %v207_v40  ;;  %v258_v57 = vadd.f32 %v257_v49, %v256_v42  ;;  %v251_v58 = vadd.f32 %v250_v51, %v249_v44 }
 0x1a5   :  { %v310_v34 = vadd.f32 %v308_v30, %v892_v29  ;;  %v309_v36 = vadd.f32 %v307_v32, %v898_v33  ;;  %v278_v59 = vsel %vm182_vm1, %v270_v53, 0.0  ;;  %v271_v60 = vsel %vm182_vm1, %v267_v55, 0.0 }
 0x1a6   :  { %v217_v63 = vrot.slane %v216_v54, 1  ;;  %v210_v0 = vrot.slane %v209_v56, 1  ;;  %v259_v1 = vrot.slane %v258_v57, 2  ;;  %v279_v2 = vrot.slane %v278_v59, 4 }
 0x1a7   :  { %v312_v39 = vmul.f32 1e-07, %v310_v34  ;;  %v311_v41 = vmul.f32 1e-07, %v309_v36  ;;  %v252_v3 = vrot.slane %v251_v58, 2  ;;  %v272_v4 = vrot.slane %v271_v60, 4 }
 0x1a8   :  { %v917_v5 = vadd.f32 %v217_v63, %v216_v54  ;;  %v919_v7 = vadd.f32 %v210_v0, %v209_v56  ;;  %v260_v8 = vadd.f32 %v259_v1, %v258_v57  ;;  %v280_v10 = vadd.f32 %v279_v2, %v278_v59 }
 0x1a9   :  { %v903_v43 = vadd.f32 1e-30, %v312_v39  ;;  %v906_v45 = vadd.f32 1e-30, %v311_v41  ;;  %v253_v13 = vadd.f32 %v252_v3, %v251_v58  ;;  %v273_v15 = vadd.f32 %v272_v4, %v271_v60 }
 0x1aa   :  { %v261_v21 = vrot.slane %v260_v8, 1  ;;  %v281_v16 = vrot.slane %v280_v10, 2 }
 0x1ab   :  { %v316_v47 = vmax.f32 %v888_v24, %v903_v43  ;;  %v912_v50 = vmax.f32 %v890_v26, %v906_v45  ;;  %v254_v25 = vrot.slane %v253_v13, 1  ;;  %v274_v28 = vrot.slane %v273_v15, 2 }
 0x1ac   :  { %v934_v32 = vadd.f32 %v261_v21, %v260_v8  ;;  %v282_v34 = vadd.f32 %v281_v16, %v280_v10 }
 0x1ad   :  { %736 = vrsqrt.f32 %v316_v47  ;;  %v937_v36 = vadd.f32 %v254_v25, %v253_v13  ;;  %v275_v37 = vadd.f32 %v274_v28, %v273_v15  ;;  %vm326_vm2 = vcmp.eq.f32.partialorder %v316_v47, inf }
 0x1ae   :  { %738 = vrsqrt.f32 %v912_v50  ;;  %v283_v41 = vrot.slane %v282_v34, 1  ;;  %v329_v49 = vand.u32 2147483648, %v316_v47  ;;  %vm328_vm3 = vcmp.eq.f32.partialorder %v316_v47, 0.0 }
 0x1af   :  { %v276_v42 = vrot.slane %v275_v37, 1  ;;  %vm319_vm4 = vcmp.eq.f32.partialorder %v912_v50, inf  ;;  %v322_v13 = vand.u32 2147483648, %v912_v50  ;;  %vm321_vm7 = vcmp.eq.f32.partialorder %v912_v50, 0.0 }
 0x1b0   :  { %v949_v51 = vadd.f32 %v283_v41, %v282_v34 }
 0x1b1   :  { %v951_v53 = vadd.f32 %v276_v42, %v275_v37 }
 0x1b7   :  { %v737_v6 = vpop.eup %736 }
 0x1b8   :  { %v739_v11 = vpop.eup %738  ;;  %v922_v14 = vmul.f32 %v737_v6, %v917_v5  ;;  %v940_v38 = vmul.f32 %v737_v6, %v934_v32  ;;  %v325_v39 = vmul.f32 %v737_v6, %v316_v47 }
 0x1b9   :  { %v925_v17 = vmul.f32 %v739_v11, %v919_v7  ;;  %v943_v40 = vmul.f32 %v739_v11, %v937_v36  ;;  %v318_v58 = vmul.f32 %v739_v11, %v912_v50 }
 0x1ba   :  { %v338_v20 = vmul.f32 %v922_v14, %v922_v14  ;;  %v360_v44 = vmul.f32 %v940_v38, %v922_v14  ;;  %v327_v46 = vsel %vm326_vm2, %v316_v47, %v325_v39  ;;  %v366_v55 = vmul.f32 %v940_v38, %v940_v38 }
 0x1bb   :  { %v337_v23 = vmul.f32 %v925_v17, %v925_v17  ;;  %v359_v48 = vmul.f32 %v943_v40, %v925_v17  ;;  %v330_v54 = vsel %vm328_vm3, %v329_v49, %v327_v46  ;;  %v365_v59 = vmul.f32 %v943_v40, %v943_v40 }
 0x1bc   :  { %v340_v27 = vsub.f32 %v882_v19, %v338_v20  ;;  %v362_v56 = vsub.f32 %v949_v51, %v360_v44  ;;  %v368_v2 = vsub.f32 %v892_v29, %v366_v55  ;;  %v320_v8 = vsel %vm319_vm4, %v912_v50, %v318_v58 }
 0x1bd   :  { %v339_v30 = vsub.f32 %v885_v22, %v337_v23  ;;  %v361_v60 = vsub.f32 %v951_v53, %v359_v48  ;;  %v367_v10 = vsub.f32 %v898_v33, %v365_v59  ;;  %v323_v16 = vsel %vm321_vm7, %v322_v13, %v320_v8 }
 0x1be   :  { %v342_v31 = vmax.f32 %v340_v27, %v903_v43 }
 0x1bf   :  { %v341_v35 = vmax.f32 %v339_v30, %v906_v45 }
 0x1c0   :  { %740 = vrsqrt.f32 %v342_v31  ;;  %vm352_vm5 = vcmp.eq.f32.partialorder %v342_v31, inf  ;;  %v355_v4 = vand.u32 2147483648, %v342_v31  ;;  %vm354_vm6 = vcmp.eq.f32.partialorder %v342_v31, 0.0 }
 0x1c1   :  { %742 = vrsqrt.f32 %v341_v35  ;;  %vm345_vm8 = vcmp.eq.f32.partialorder %v341_v35, inf  ;;  %vm347_vm9 = vcmp.eq.f32.partialorder %v341_v35, 0.0 }
 0x1c2   :  { %744 = vrcp.f32 %v330_v54 }
 0x1ca   :  { %v741_v57 = vpop.eup %740 }
 0x1cb   :  { %v743_v63 = vpop.eup %742  ;;  %v351_v0 = vmul.f32 %v741_v57, %v342_v31  ;;  %v364_v1 = vmul.f32 %v741_v57, %v362_v56 }
 0x1cc   :  { %v961_v47 = vmul.f32 %v743_v63, %v361_v60  ;;  %v344_v25 = vmul.f32 %v743_v63, %v341_v35  ;;  %v972_v30 = vpop.eup %744 }
 0x1cd   :  { %v353_v3 = vsel %vm352_vm5, %v342_v31, %v351_v0  ;;  %v370_v6 = vmul.f32 %v364_v1, %v364_v1  ;;  %v348_v31 = vand.u32 2147483648, %v341_v35  ;;  %v402_v50 = vmul.f32 %v972_v30, %v922_v14 }
 0x1ce   :  { %v369_v11 = vmul.f32 %v961_v47, %v961_v47  ;;  %v356_v15 = vsel %vm354_vm6, %v355_v4, %v353_v3  ;;  %v346_v28 = vsel %vm345_vm8, %v341_v35, %v344_v25  ;;  %v408_v58 = vmul.f32 %v972_v30, %v940_v38 }
 0x1cf   :  { %v372_v20 = vsub.f32 %v368_v2, %v370_v6  ;;  %746 = vrcp.f32 %v356_v15  ;;  %v349_v34 = vsel %vm347_vm9, %v348_v31, %v346_v28  ;;  %v404_v39 = vsub.f32 0.0, %v402_v50 }
 0x1d0   :  { %v371_v21 = vsub.f32 %v367_v10, %v369_v11 }
 0x1d1   :  { %v374_v23 = vmax.f32 %v372_v20, %v903_v43 }
 0x1d2   :  { %v373_v27 = vmax.f32 %v371_v21, %v906_v45 }
 0x1d3   :  { %748 = vrsqrt.f32 %v374_v23  ;;  %vm384_vm10 = vcmp.eq.f32.partialorder %v374_v23, inf  ;;  %v387_v44 = vand.u32 2147483648, %v374_v23  ;;  %vm386_vm11 = vcmp.eq.f32.partialorder %v374_v23, 0.0 }
 0x1d4   :  { %750 = vrcp.f32 %v323_v16  ;;  %vm377_vm12 = vcmp.eq.f32.partialorder %v373_v27, inf  ;;  %v380_v56 = vand.u32 2147483648, %v373_v27  ;;  %vm379_vm13 = vcmp.eq.f32.partialorder %v373_v27, 0.0 }
 0x1d5   :  { %752 = vrsqrt.f32 %v373_v27 }
 0x1d6   :  { %754 = vrcp.f32 %v349_v34 }
 0x1d9   :  { %v976_v37 = vpop.eup %746 }
 0x1da   :  { %v981_v46 = vmul.f32 %v976_v37, %v404_v39  ;;  %v418_v0 = vmul.f32 %v976_v37, %v364_v1  ;;  %v1037_v31 = vmul.f32 %v976_v37, %v917_v5 }
 0x1dc   :  { %v410_v54 = vmul.f32 %v981_v46, %v364_v1  ;;  %v420_v4 = vsub.f32 0.0, %v418_v0  ;;  %v1003_v38 = vmul.f32 %v981_v46, %v888_v24  ;;  %v440_v1 = vmul.f32 %v981_v46, %v917_v5 }
 0x1dd   :  { %v749_v43 = vpop.eup %748 }
 0x1de   :  { %v978_v41 = vpop.eup %750  ;;  %v383_v45 = vmul.f32 %v749_v43, %v374_v23  ;;  %v412_v63 = vadd.f32 %v410_v54, %v408_v58  ;;  %v438_v16 = vmul.f32 %v1003_v38, %v981_v46 }
 0x1df   :  { %v753_v42 = vpop.eup %752  ;;  %v401_v14 = vmul.f32 %v978_v41, %v925_v17  ;;  %v407_v10 = vmul.f32 %v978_v41, %v943_v40  ;;  %v442_v40 = vmul.f32 %v976_v37, %v440_v1 }
 0x1e0   :  { %v385_v48 = vsel %vm384_vm10, %v374_v23, %v383_v45  ;;  %v376_v49 = vmul.f32 %v753_v42, %v373_v27  ;;  %v986_v57 = vpop.eup %754  ;;  %v414_v17 = vsub.f32 0.0, %v412_v63 }
 0x1e1   :  { %v388_v35 = vsel %vm386_vm11, %v387_v44, %v385_v48  ;;  %v403_v59 = vsub.f32 0.0, %v401_v14  ;;  %v417_v34 = vmul.f32 %v986_v57, %v961_v47  ;;  %v444_v42 = vadd.f32 %v442_v40, %v438_v16 }
 0x1e2   :  { %756 = vrcp.f32 %v388_v35  ;;  %v378_v55 = vsel %vm377_vm12, %v373_v27, %v376_v49  ;;  %v450_v14 = vmul.f32 %v976_v37, %v882_v19 }
 0x1e3   :  { %v381_v60 = vsel %vm379_vm13, %v380_v56, %v378_v55  ;;  %v992_v2 = vmul.f32 %v986_v57, %v403_v59  ;;  %v419_v54 = vsub.f32 0.0, %v417_v34 }
 0x1e4   :  { %758 = vrcp.f32 %v381_v60  ;;  %v452_v1 = vmul.f32 %v976_v37, %v450_v14 }
 0x1e5   :  { %v409_v6 = vmul.f32 %v992_v2, %v961_v47  ;;  %v446_v47 = vmul.f32 %v1037_v31, %v981_v46  ;;  %v1059_v49 = vmul.f32 %v992_v2, %v890_v26 }
 0x1e7   :  { %v411_v21 = vadd.f32 %v409_v6, %v407_v10  ;;  %v424_v6 = vmul.f32 %v972_v30, %v888_v24  ;;  %v437_v10 = vmul.f32 %v1059_v49, %v992_v2 }
 0x1e9   :  { %v413_v45 = vsub.f32 0.0, %v411_v21 }
 0x1ec   :  { %v994_v3 = vpop.eup %756 }
 0x1ed   :  { %v999_v8 = vmul.f32 %v994_v3, %v414_v17  ;;  %v1010_v11 = vmul.f32 %v994_v3, %v420_v4  ;;  %v1063_v55 = vmul.f32 %v994_v3, %v934_v32  ;;  %v1082_v0 = vmul.f32 %v994_v3, %v949_v51 }
 0x1ee   :  { %v1033_v28 = vpop.eup %758  ;;  %v534_v16 = vmul.f32 %v994_v3, %v892_v29 }
 0x1ef   :  { %v1014_v13 = vmul.f32 %v999_v8, %v888_v24  ;;  %v1018_v15 = vmul.f32 %v999_v8, %v917_v5  ;;  %v506_v20 = vmul.f32 %v999_v8, %v934_v32  ;;  %v1027_v23 = vmul.f32 %v1010_v11, %v917_v5 }
 0x1f0   :  { %v1043_v50 = vmul.f32 %v1010_v11, %v882_v19  ;;  %v520_v5 = vmul.f32 %v1010_v11, %v949_v51  ;;  %v1051_v35 = vmul.f32 %v1033_v28, %v413_v45  ;;  %v439_v19 = vmul.f32 %v992_v2, %v919_v7 }
 0x1f1   :  { %v500_v25 = vmul.f32 %v1014_v13, %v999_v8  ;;  %v502_v27 = vmul.f32 %v1018_v15, %v1010_v11  ;;  %v508_v39 = vmul.f32 %v994_v3, %v506_v20  ;;  %v512_v48 = vmul.f32 %v1027_v23, %v999_v8 }
 0x1f2   :  { %v516_v58 = vmul.f32 %v1043_v50, %v1010_v11  ;;  %v1069_v59 = vmul.f32 %v1051_v35, %v890_v26  ;;  %v1074_v60 = vmul.f32 %v1033_v28, %v419_v54  ;;  %v1078_v63 = vmul.f32 %v1051_v35, %v919_v7 }
 0x1f3   :  { %v504_v43 = vadd.f32 %v502_v27, %v500_v25  ;;  %v448_v32 = vadd.f32 %v446_v47, %v444_v42  ;;  %v522_v4 = vmul.f32 %v994_v3, %v520_v5  ;;  %v526_v21 = vmul.f32 %v1063_v55, %v999_v8 }
 0x1f4   :  { %v499_v51 = vmul.f32 %v1069_v59, %v1051_v35  ;;  %v441_v40 = vmul.f32 %v986_v57, %v439_v19  ;;  %v1099_v24 = vmul.f32 %v1074_v60, %v919_v7  ;;  %v501_v25 = vmul.f32 %v1078_v63, %v1074_v60 }
 0x1f5   :  { %v510_v44 = vadd.f32 %v508_v39, %v504_v43  ;;  %v505_v27 = vmul.f32 %v1051_v35, %v937_v36  ;;  %v1105_v34 = vadd.f32 %v452_v1, %v448_v32  ;;  %v530_v29 = vmul.f32 %v1082_v0, %v1010_v11 }
 0x1f6   :  { %v1111_v39 = vmul.f32 %v986_v57, %v919_v7  ;;  %v1115_v45 = vmul.f32 %v1074_v60, %v885_v22  ;;  %v503_v42 = vadd.f32 %v501_v25, %v499_v51  ;;  %v536_v47 = vmul.f32 %v994_v3, %v534_v16 }
 0x1f7   :  { %v514_v56 = vadd.f32 %v512_v48, %v510_v44  ;;  %v507_v44 = vmul.f32 %v1033_v28, %v505_v27  ;;  %v426_v48 = vmul.f32 %v972_v30, %v424_v6  ;;  %v443_v14 = vadd.f32 %v441_v40, %v437_v10 }
 0x1f8   :  { %v519_v7 = vmul.f32 %v1074_v60, %v951_v53  ;;  %v449_v32 = vmul.f32 %v986_v57, %v885_v22  ;;  %v515_v1 = vmul.f32 %v1115_v45, %v1074_v60  ;;  %v423_v40 = vmul.f32 %v978_v41, %v890_v26 }
 0x1f9   :  { %v518_v17 = vadd.f32 %v516_v58, %v514_v56  ;;  %v509_v54 = vadd.f32 %v507_v44, %v503_v42  ;;  %v511_v56 = vmul.f32 %v1099_v24, %v1051_v35  ;;  %v540_v19 = vadd.f32 %v1105_v34, %v426_v48 }
 0x1fa   :  { %v521_v22 = vmul.f32 %v1033_v28, %v519_v7  ;;  %v425_v26 = vmul.f32 %v978_v41, %v423_v40  ;;  %v430_v7 = vmul.f32 %v972_v30, %v1003_v38  ;;  %v462_v38 = vmul.f32 %v972_v30, %v1027_v23 }
 0x1fb   :  { %v524_v20 = vadd.f32 %v522_v4, %v518_v17  ;;  %v445_v17 = vmul.f32 %v1111_v39, %v992_v2  ;;  %v1133_v4 = vmul.f32 %v1033_v28, %v937_v36  ;;  %v513_v6 = vadd.f32 %v511_v56, %v509_v54 }
 0x1fc   :  { %v451_v36 = vmul.f32 %v986_v57, %v449_v32  ;;  %v472_v32 = vmul.f32 %v1014_v13, %v981_v46 }
 0x1fd   :  { %v528_v43 = vadd.f32 %v526_v21, %v524_v20  ;;  %v447_v20 = vadd.f32 %v445_v17, %v443_v14  ;;  %v1140_v21 = vmul.f32 %v1033_v28, %v951_v53  ;;  %v517_v16 = vadd.f32 %v515_v1, %v513_v6 }
 0x1fe   :  { %v525_v27 = vmul.f32 %v1133_v4, %v1051_v35  ;;  %v434_v17 = vmul.f32 %v972_v30, %v1037_v31 }
 0x1ff   :  { %v532_v5 = vadd.f32 %v530_v29, %v528_v43  ;;  %v523_v25 = vadd.f32 %v521_v22, %v517_v16  ;;  %v533_v43 = vmul.f32 %v1033_v28, %v898_v33  ;;  %v1152_v53 = vadd.f32 %v451_v36, %v447_v20 }
 0x200   :  { %v529_v44 = vmul.f32 %v1140_v21, %v1074_v60  ;;  %v436_v1 = vadd.f32 %v434_v17, %v430_v7  ;;  %v458_v16 = vmul.f32 %v972_v30, %v1014_v13 }
 0x201   :  { %v1124_v58 = vadd.f32 %v536_v47, %v532_v5  ;;  %v527_v42 = vadd.f32 %v525_v27, %v523_v25  ;;  %v535_v14 = vmul.f32 %v1033_v28, %v533_v43  ;;  %v539_v54 = vadd.f32 %v1152_v53, %v425_v26 }
 0x202   :  { %v464_v27 = vadd.f32 %v462_v38, %v458_v16 }
 0x203   :  { %v542_v10 = vadd.f32 %v540_v19, %v1124_v58  ;;  %v531_v47 = vadd.f32 %v529_v44, %v527_v42  ;;  %v468_v44 = vmul.f32 %v972_v30, %v1063_v55 }
 0x205   :  { %v544_v51 = vmul.f32 1e-07, %v542_v10  ;;  %v1160_v56 = vadd.f32 %v535_v14, %v531_v47  ;;  %v471_v47 = vmul.f32 %v1069_v59, %v992_v2  ;;  %v475_v14 = vmul.f32 %v986_v57, %v1078_v63 }
 0x207   :  { %v1150_v29 = vadd.f32 1e-30, %v544_v51  ;;  %v541_v33 = vadd.f32 %v539_v54, %v1160_v56  ;;  %v470_v54 = vadd.f32 %v468_v44, %v464_v27  ;;  %v477_v63 = vadd.f32 %v475_v14, %v471_v47 }
 0x208   :  { %v467_v27 = vmul.f32 %v978_v41, %v1133_v4 }
 0x209   :  { %v548_v5 = vmax.f32 %v426_v48, %v1150_v29  ;;  %v543_v19 = vmul.f32 1e-07, %v541_v33  ;;  %v476_v48 = vmul.f32 %v976_v37, %v1018_v15  ;;  %v480_v15 = vmul.f32 %v1027_v23, %v981_v46 }
 0x20a   :  { %v429_v23 = vmul.f32 %v978_v41, %v1059_v49  ;;  %v433_v33 = vmul.f32 %v978_v41, %v1111_v39  ;;  %v496_v39 = vmul.f32 %v976_v37, %v1082_v0 }
 0x20b   :  { %760 = vrsqrt.f32 %v548_v5  ;;  %v1171_v6 = vadd.f32 1e-30, %v543_v19  ;;  %v478_v22 = vadd.f32 %v476_v48, %v472_v32  ;;  %vm558_vm14 = vcmp.eq.f32.partialorder %v548_v5, inf }
 0x20c   :  { %v561_v31 = vand.u32 2147483648, %v548_v5  ;;  %vm560_vm15 = vcmp.eq.f32.partialorder %v548_v5, 0.0  ;;  %v435_v49 = vadd.f32 %v433_v33, %v429_v23  ;;  %v457_v32 = vmul.f32 %v978_v41, %v1069_v59 }
 0x20d   :  { %v547_v10 = vmax.f32 %v425_v26, %v1171_v6  ;;  %v482_v13 = vadd.f32 %v480_v15, %v478_v22  ;;  %v486_v26 = vmul.f32 %v976_v37, %v1043_v50  ;;  %v490_v50 = vmul.f32 %v1063_v55, %v981_v46 }
 0x20e   :  { %v461_v48 = vmul.f32 %v978_v41, %v1099_v24  ;;  %v479_v55 = vmul.f32 %v1099_v24, %v992_v2 }
 0x20f   :  { %762 = vrsqrt.f32 %v547_v10  ;;  %vm551_vm1 = vcmp.eq.f32.partialorder %v547_v10, inf  ;;  %vm553_vm2 = vcmp.eq.f32.partialorder %v547_v10, 0.0 }
 0x210   :  { %v463_v15 = vadd.f32 %v461_v48, %v457_v32 }
 0x212   :  { %v469_v23 = vadd.f32 %v467_v27, %v463_v15 }
 0x215   :  { %v761_v20 = vpop.eup %760 }
 0x216   :  { %v557_v51 = vmul.f32 %v761_v20, %v548_v5  ;;  %v1178_v40 = vmul.f32 %v761_v20, %v436_v1  ;;  %v1200_v7 = vmul.f32 %v761_v20, %v470_v54  ;;  %v554_v20 = vand.u32 2147483648, %v547_v10 }
 0x217   :  { %v489_v54 = vmul.f32 %v1133_v4, %v992_v2 }
 0x218   :  { %v559_v36 = vsel %vm558_vm14, %v548_v5, %v557_v51  ;;  %v570_v25 = vmul.f32 %v1178_v40, %v1178_v40  ;;  %v592_v38 = vmul.f32 %v1200_v7, %v1178_v40 }
 0x219   :  { %v562_v43 = vsel %vm560_vm15, %v561_v31, %v559_v36  ;;  %v763_v19 = vpop.eup %762  ;;  %v481_v31 = vadd.f32 %v479_v55, %v477_v63 }
 0x21a   :  { %v572_v42 = vsub.f32 %v1105_v34, %v570_v25  ;;  %764 = vrcp.f32 %v562_v43  ;;  %v488_v34 = vadd.f32 %v486_v26, %v482_v13  ;;  %v550_v1 = vmul.f32 %v763_v19, %v547_v10 }
 0x21b   :  { %v1206_v16 = vmul.f32 %v763_v19, %v435_v49  ;;  %v598_v43 = vmul.f32 %v1200_v7, %v1200_v7 }
 0x21c   :  { %v574_v5 = vmax.f32 %v572_v42, %v1150_v29  ;;  %v492_v17 = vadd.f32 %v490_v50, %v488_v34  ;;  %v552_v59 = vsel %vm551_vm1, %v547_v10, %v550_v1  ;;  %v485_v10 = vmul.f32 %v986_v57, %v1115_v45 }
 0x21d   :  { %v569_v22 = vmul.f32 %v1206_v16, %v1206_v16  ;;  %v555_v36 = vsel %vm553_vm2, %v554_v20, %v552_v59  ;;  %v1237_v34 = vmul.f32 %v763_v19, %v469_v23  ;;  %v600_v50 = vsub.f32 %v1124_v58, %v598_v43 }
 0x21e   :  { %766 = vrsqrt.f32 %v574_v5  ;;  %v498_v25 = vadd.f32 %v496_v39, %v492_v17  ;;  %v487_v47 = vadd.f32 %v485_v10, %v481_v31  ;;  %vm584_vm3 = vcmp.eq.f32.partialorder %v574_v5, inf }
 0x21f   :  { %v571_v24 = vsub.f32 %v1152_v53, %v569_v22  ;;  %768 = vrcp.f32 %v555_v36  ;;  %v587_v45 = vand.u32 2147483648, %v574_v5  ;;  %vm586_vm4 = vcmp.eq.f32.partialorder %v574_v5, 0.0 }
 0x220   :  { %v594_v13 = vsub.f32 %v498_v25, %v592_v38  ;;  %v491_v48 = vadd.f32 %v489_v54, %v487_v47  ;;  %v495_v17 = vmul.f32 %v986_v57, %v1140_v21  ;;  %v591_v1 = vmul.f32 %v1237_v34, %v1206_v16 }
 0x221   :  { %v573_v44 = vmax.f32 %v571_v24, %v1171_v6  ;;  %v597_v21 = vmul.f32 %v1237_v34, %v1237_v34 }
 0x223   :  { %770 = vrsqrt.f32 %v573_v44  ;;  %vm577_vm5 = vcmp.eq.f32.partialorder %v573_v44, inf  ;;  %v580_v22 = vand.u32 2147483648, %v573_v44  ;;  %vm579_vm6 = vcmp.eq.f32.partialorder %v573_v44, 0.0 }
 0x224   :  { %v1216_v51 = vpop.eup %764 }
 0x225   :  { %v656_v0 = vmul.f32 %v1216_v51, %v972_v30  ;;  %v634_v58 = vmul.f32 %v1216_v51, %v1178_v40 }
 0x227   :  { %v684_v42 = vmul.f32 %v656_v0, %v831_v62  ;;  %v636_v15 = vsub.f32 0.0, %v634_v58  ;;  %v599_v0 = vsub.f32 %v1160_v56, %v597_v21 }
 0x228   :  { %v767_v26 = vpop.eup %766 }
 0x229   :  { %v583_v14 = vmul.f32 %v767_v26, %v574_v5  ;;  %v1229_v53 = vmul.f32 %v767_v26, %v594_v13  ;;  %686 = vst.msk [vmem:[%s1322_s2 + $0x18] sm:$0x3f] %vm175_vm0, %v684_v42  ;;  %v1247_v19 = vpop.eup %768 }
 0x22a   :  { %v655_v55 = vmul.f32 %v1247_v19, %v978_v41  ;;  %v633_v54 = vmul.f32 %v1247_v19, %v1206_v16 }
 0x22b   :  { %v585_v33 = vsel %vm584_vm3, %v574_v5, %v583_v14  ;;  %v602_v49 = vmul.f32 %v1229_v53, %v1229_v53  ;;  %v497_v5 = vadd.f32 %v495_v17, %v491_v48  ;;  %v640_v48 = vmul.f32 %v1216_v51, %v1200_v7 }
 0x22c   :  { %v588_v32 = vsel %vm586_vm4, %v587_v45, %v585_v33 }
 0x22d   :  { %v604_v63 = vsub.f32 %v600_v50, %v602_v49  ;;  %772 = vrcp.f32 %v588_v32  ;;  %v593_v39 = vsub.f32 %v497_v5, %v591_v1  ;;  %v771_v20 = vpop.eup %770 }
 0x22e   :  { %v576_v38 = vmul.f32 %v771_v20, %v573_v44 }
 0x22f   :  { %v606_v4 = vmax.f32 %v604_v63, %v1150_v29  ;;  %v1255_v59 = vmul.f32 %v771_v20, %v593_v39  ;;  %v683_v29 = vmul.f32 %v655_v55, %v823_v52 }
 0x230   :  { %v578_v31 = vsel %vm577_vm5, %v573_v44, %v576_v38 }
 0x231   :  { %774 = vrsqrt.f32 %v606_v4  ;;  %v601_v40 = vmul.f32 %v1255_v59, %v1255_v59  ;;  %685 = vst.msk [vmem:[%s1322_s2] sm:$0x3f] %vm175_vm0, %v683_v29  ;;  %v581_v25 = vsel %vm579_vm6, %v580_v22, %v578_v31  ;;  %vm616_vm7 = vcmp.eq.f32.partialorder %v606_v4, inf }
 0x232   :  { %776 = vrcp.f32 %v581_v25  ;;  %vm618_vm8 = vcmp.eq.f32.partialorder %v606_v4, 0.0  ;;  %v619_v47 = vand.u32 2147483648, %v606_v4 }
 0x233   :  { %v603_v27 = vsub.f32 %v599_v0, %v601_v40 }
 0x235   :  { %v605_v44 = vmax.f32 %v603_v27, %v1171_v6  ;;  %v635_v6 = vsub.f32 0.0, %v633_v54 }
 0x237   :  { %v773_v36 = vpop.eup %772  ;;  %778 = vrsqrt.f32 %v605_v44  ;;  %vm609_vm9 = vcmp.eq.f32.partialorder %v605_v44, inf  ;;  %v612_v22 = vand.u32 2147483648, %v605_v44  ;;  %vm611_vm10 = vcmp.eq.f32.partialorder %v605_v44, 0.0 }
 0x238   :  { %v638_v24 = vmul.f32 %v773_v36, %v636_v15  ;;  %v660_v13 = vmul.f32 %v773_v36, %v981_v46  ;;  %v664_v43 = vmul.f32 %v773_v36, %v976_v37  ;;  %v650_v1 = vmul.f32 %v773_v36, %v1229_v53 }
 0x23a   :  { %v658_v10 = vmul.f32 %v972_v30, %v638_v24  ;;  %v690_v45 = vmul.f32 %v664_v43, %v838_v9  ;;  %v642_v49 = vmul.f32 %v638_v24, %v1229_v53  ;;  %v652_v21 = vsub.f32 0.0, %v650_v1 }
 0x23b   :  { %v775_v42 = vpop.eup %774  ;;  %v639_v43 = vmul.f32 %v1247_v19, %v1237_v34 }
 0x23c   :  { %v615_v26 = vmul.f32 %v775_v42, %v606_v4  ;;  %v662_v23 = vadd.f32 %v660_v13, %v658_v10  ;;  %v777_v32 = vpop.eup %776  ;;  %v644_v17 = vadd.f32 %v642_v49, %v640_v48 }
 0x23d   :  { %v637_v63 = vmul.f32 %v777_v32, %v635_v6  ;;  %v663_v5 = vmul.f32 %v777_v32, %v986_v57 }
 0x23e   :  { %v617_v14 = vsel %vm616_vm7, %v606_v4, %v615_v26  ;;  %v688_v56 = vmul.f32 %v662_v23, %v831_v62  ;;  %v659_v4 = vmul.f32 %v777_v32, %v992_v2  ;;  %v646_v20 = vsub.f32 0.0, %v644_v17 }
 0x23f   :  { %v620_v33 = vsel %vm618_vm8, %v619_v47, %v617_v14  ;;  %v657_v16 = vmul.f32 %v978_v41, %v637_v63  ;;  %v689_v51 = vmul.f32 %v663_v5, %v829_v61  ;;  %v641_v27 = vmul.f32 %v637_v63, %v1255_v59 }
 0x240   :  { %780 = vrcp.f32 %v620_v33  ;;  %v692_v50 = vadd.f32 %v690_v45, %v688_v56 }
 0x241   :  { %v779_v58 = vpop.eup %778  ;;  %v661_v55 = vadd.f32 %v659_v4, %v657_v16  ;;  %v643_v42 = vadd.f32 %v641_v27, %v639_v43 }
 0x242   :  { %694 = vst.msk [vmem:[%s1322_s2 + $0x1e] sm:$0x3f] %vm175_vm0, %v692_v50  ;;  %v608_v39 = vmul.f32 %v779_v58, %v605_v44 }
 0x243   :  { %v687_v7 = vmul.f32 %v661_v55, %v823_v52  ;;  %v645_v14 = vsub.f32 0.0, %v643_v42 }
 0x244   :  { %v610_v29 = vsel %vm609_vm9, %v605_v44, %v608_v39 }
 0x245   :  { %v613_v40 = vsel %vm611_vm10, %v612_v22, %v610_v29  ;;  %v691_v36 = vadd.f32 %v689_v51, %v687_v7 }
 0x246   :  { %782 = vrcp.f32 %v613_v40 }
 0x247   :  { %693 = vst.msk [vmem:[%s1322_s2 + $0x6] sm:$0x3f] %vm175_vm0, %v691_v36 }
 0x24a   :  { %v781_v38 = vpop.eup %780 }
 0x24b   :  { %v648_v53 = vmul.f32 %v781_v38, %v646_v20  ;;  %v654_v15 = vmul.f32 %v781_v38, %v652_v21  ;;  %v678_v31 = vmul.f32 %v781_v38, %v1010_v11  ;;  %v672_v13 = vmul.f32 %v781_v38, %v999_v8 }
 0x24d   :  { %v666_v25 = vmul.f32 %v972_v30, %v648_v53  ;;  %v668_v0 = vmul.f32 %v654_v15, %v981_v46  ;;  %v676_v24 = vmul.f32 %v976_v37, %v654_v15  ;;  %v682_v46 = vmul.f32 %v781_v38, %v994_v3 }
 0x24e   :  { %v649_v37 = vmul.f32 %v777_v32, %v1255_v59 }
 0x24f   :  { %v670_v10 = vadd.f32 %v668_v0, %v666_v25  ;;  %v680_v11 = vadd.f32 %v678_v31, %v676_v24  ;;  %v702_v47 = vmul.f32 %v682_v46, %v848_v18 }
 0x250   :  { %v651_v56 = vsub.f32 0.0, %v649_v37  ;;  %v783_v8 = vpop.eup %782 }
 0x251   :  { %v674_v30 = vadd.f32 %v672_v13, %v670_v10  ;;  %v698_v26 = vmul.f32 %v680_v11, %v838_v9  ;;  %v647_v54 = vmul.f32 %v783_v8, %v645_v14  ;;  %v677_v34 = vmul.f32 %v783_v8, %v1074_v60 }
 0x252   :  { %v653_v33 = vmul.f32 %v783_v8, %v651_v56  ;;  %v671_v19 = vmul.f32 %v783_v8, %v1051_v35  ;;  %v681_v49 = vmul.f32 %v783_v8, %v1033_v28 }
 0x253   :  { %v696_v44 = vmul.f32 %v674_v30, %v831_v62  ;;  %v665_v3 = vmul.f32 %v978_v41, %v647_v54 }
 0x254   :  { %v667_v62 = vmul.f32 %v653_v33, %v992_v2  ;;  %v675_v9 = vmul.f32 %v986_v57, %v653_v33  ;;  %v701_v41 = vmul.f32 %v681_v49, %v843_v12 }
 0x255   :  { %v700_v23 = vadd.f32 %v698_v26, %v696_v44 }
 0x256   :  { %v669_v18 = vadd.f32 %v667_v62, %v665_v3  ;;  %v679_v59 = vadd.f32 %v677_v34, %v675_v9 }
 0x257   :  { %v704_v45 = vadd.f32 %v702_v47, %v700_v23 }
 0x258   :  { %v673_v50 = vadd.f32 %v671_v19, %v669_v18  ;;  %v697_v32 = vmul.f32 %v679_v59, %v829_v61 }
 0x259   :  { %706 = vst.msk [vmem:[%s1322_s2 + $0x24] sm:$0x3f] %vm175_vm0, %v704_v45 }
 0x25a   :  { %v695_v6 = vmul.f32 %v673_v50, %v823_v52 }
 0x25c   :  { %v699_v48 = vadd.f32 %v697_v32, %v695_v6 }
 0x25e   :  { %v703_v63 = vadd.f32 %v701_v41, %v699_v48 }
 0x260   :  { %705 = vst.msk [vmem:[%s1322_s2 + $0xc] sm:$0x3f] %vm175_vm0, %v703_v63 }

</bundles_post_ra>
